<compile_context>
chip_gen: v5e
topology: v5e:2x2
jax: 0.10.0
libtpu: 0.0.40
codegen_flags: <defaults>
</compile_context>

<pallas_src>
import math

import jax
import jax.numpy as jnp
from jax.experimental import pallas as pl
from jax.experimental.pallas import tpu as pltpu


def _drop_path_kernel(scale_ref, x_ref, o_ref):
    """(BB, 1) f32 per-sample scale broadcast over a (BB, FT) lane-dense tile."""
    # Single broadcast vmul per vreg (plus a cast for sub-f32 dtypes); the
    # pipeline is saturated by the HBM DMA, not the VPU.
    o_ref[...] = (x_ref[...] * scale_ref[...]).astype(o_ref.dtype)


def _round_up(x, m):
    return ((x + m - 1) // m) * m


def _default_block_bytes():
    """Per-generation tile budget for this HBM-bandwidth-bound op."""
    try:
        info = pltpu.get_tpu_info()
    except Exception:
        return 4 << 20
    name = ""
    for attr in ("chip_version", "version", "chip_name", "name"):
        v = getattr(info, attr, None)
        if v is not None:
            name = str(v).lower()
            break
    if "v5e" in name or "v5lite" in name or "5lite" in name:
        # 0.82 TB/s HBM: 2 MiB tiles already amortize the ~0.35us step cost.
        return 2 << 20
    vmem = getattr(info, "vmem_capacity_bytes", 128 << 20)
    if vmem <= (64 << 20):
        # v7x: 3.2 TB/s HBM makes 2 MiB tiles overhead-heavy; 6 MiB tiles ->
        # ~24 MiB double-buffered, well under 64 MiB physical VMEM.
        return 6 << 20
    return 4 << 20  # v6e / unknown


def _choose_blocks(B, F, itemsize, target_bytes):
    """Pick a (BB, FT) block that is ~target_bytes and TPU-tileable.

    sub = dtype-aware sublane packing multiple (8 f32, 16 bf16, 32 int8/fp8).
    Guarantees BB % sub == 0 or BB == B, and FT % 128 == 0 or FT == F
    (satisfying the (8, 128) BlockSpec constraint).
    """
    sub = max(8, 32 // itemsize)
    bytes_per_sample = F * itemsize
    # Whole tensor fits in one block.
    if B * bytes_per_sample <= target_bytes:
        # Still split the batch into >= 2 blocks when possible so both v7x
        # TensorCores get a "parallel" block (costs one extra ~0.35us step).
        if B >= 2 * sub:
            return min(_round_up((B + 1) // 2, sub), B), F
        return B, F
    # Chunk the batch: as many samples as fit the budget, rounded to sub.
    bb = target_bytes // bytes_per_sample
    if bb >= sub:
        return min((bb // sub) * sub, B), F
    # Individual samples are large: small batch chunk and tile features.
    bb = sub if B >= sub else B
    ft = max(128, (target_bytes // (bb * itemsize)) // 128 * 128)
    ft = min(ft, F)
    return bb, ft


def drop_path(x, drop_prob: float = 0.0, training: bool = False, *,
              key=None, block_bytes=None, donate_x: bool = False):
    """Per-sample stochastic depth (same semantics as the PyTorch module)."""
    if drop_prob == 0.0 or not training:
        return x
    keep_prob = 1.0 - float(drop_prob)
    if keep_prob <= 0.0:
        # drop_prob == 1.0: every sample dropped; avoid the 1/keep_prob NaN.
        return jnp.zeros_like(x)
    if key is None:
        raise ValueError("drop_path needs a PRNG key when training with drop_prob > 0")

    B = x.shape[0]
    F = math.prod(x.shape[1:])
    itemsize = jnp.dtype(x.dtype).itemsize

    # Per-sample uniforms + PyTorch's floor trick, in float32 so the keep/drop
    # decision and the 1/keep_prob factor are exact; the mixed-precision
    # multiply + cast happen inside the kernel.
    u = jax.random.uniform(key, (B,), dtype=jnp.float32)
    scale = (jnp.floor(keep_prob + u) / keep_prob).reshape(B, 1)

    x2 = x.reshape(B, F)  # lane-dense slab; free reshape at the XLA level
    if block_bytes is None:
        block_bytes = _default_block_bytes()
    bb, ft = _choose_blocks(B, F, itemsize, block_bytes)
    grid = (pl.cdiv(B, bb), pl.cdiv(F, ft))

    # Explicit VMEM budget: double-buffered x + out tiles, plus the (bb, 1)
    # f32 scale tile (lane-padded to 128), plus slack for internal scratch.
    x_tile_bytes = bb * ft * itemsize
    scale_tile_bytes = _round_up(bb, 8) * 128 * 4
    vmem_limit = 2 * (2 * x_tile_bytes + scale_tile_bytes) + (2 << 20)
    vmem_limit = max(int(vmem_limit), 4 << 20)

    out = pl.pallas_call(
        _drop_path_kernel,
        out_shape=jax.ShapeDtypeStruct((B, F), x.dtype),
        grid=grid,
        in_specs=[
            pl.BlockSpec((bb, 1), lambda i, j: (i, 0)),    # per-sample scales
            pl.BlockSpec((bb, ft), lambda i, j: (i, j)),   # multi-sample x tile
        ],
        out_specs=pl.BlockSpec((bb, ft), lambda i, j: (i, j)),
        input_output_aliases=({1: 0} if donate_x else {}),
        cost_estimate=pl.CostEstimate(
            flops=B * F,
            transcendentals=0,
            bytes_accessed=2 * B * F * itemsize + 4 * B),
        compiler_params=pltpu.CompilerParams(
            # Both axes independent -> megacore (v7x) can shard them.
            dimension_semantics=("parallel", "parallel"),
            vmem_limit_bytes=vmem_limit),
    )(scale, x2)
    return out.reshape(x.shape)


class DropPath:
    """JAX/Pallas counterpart of the PyTorch DropPath module."""

    def __init__(self, drop_prob=None):
        self.drop_prob = drop_prob if drop_prob is not None else 0.0
        self.training = True

    def __call__(self, x, *, key=None):
        return drop_path(x, self.drop_prob, self.training, key=key)


if __name__ == "__main__":
    key = jax.random.PRNGKey(0)
    k_x, k_mask, k_x2, k_mask2, k_x3, k_mask3 = jax.random.split(key, 6)

    drop_prob = 0.25
    keep_prob = 1.0 - drop_prob

    # --- small ViT-like demo shape: single block, B < 2*sublane ---
    B, N, D = 2, 8, 32
    x = jax.random.normal(k_x, (B, N, D), dtype=jnp.float32)

    module = DropPath(drop_prob=drop_prob)
    module.training = True
    out = jax.block_until_ready(module(x, key=k_mask))

    u = jax.random.uniform(k_mask, (B,), dtype=jnp.float32)
    scale = jnp.floor(keep_prob + u) / keep_prob
    ref = x * scale.reshape(B, 1, 1)
    assert jnp.allclose(out, ref, atol=1e-6, rtol=1e-6), "mismatch vs reference (f32)"

    # --- force the multi-block feature-tiling path with a tiny block budget ---
    B2, N2, D2 = 16, 8, 128
    x2 = jax.random.normal(k_x2, (B2, N2, D2), dtype=jnp.float32)
    out2 = jax.block_until_ready(
        drop_path(x2, drop_prob, True, key=k_mask2, block_bytes=16 * 1024))
    u2 = jax.random.uniform(k_mask2, (B2,), dtype=jnp.float32)
    scale2 = jnp.floor(keep_prob + u2) / keep_prob
    ref2 = x2 * scale2.reshape(B2, 1, 1)
    assert jnp.allclose(out2, ref2, atol=1e-6, rtol=1e-6), "mismatch vs reference (tiled)"

    # --- same tensor with the default budget: exercises the >=2-block split ---
    out2b = jax.block_until_ready(drop_path(x2, drop_prob, True, key=k_mask2))
    assert jnp.allclose(out2b, ref2, atol=1e-6, rtol=1e-6), "mismatch vs reference (split)"

    # --- bf16, forced tiling: exercises the 16-row sublane-packed batch block ---
    B3, N3, D3 = 32, 8, 128
    x3 = jax.random.normal(k_x3, (B3, N3, D3), dtype=jnp.bfloat16)
    out3 = jax.block_until_ready(
        drop_path(x3, drop_prob, True, key=k_mask3, block_bytes=16 * 1024))
    u3 = jax.random.uniform(k_mask3, (B3,), dtype=jnp.float32)
    scale3 = jnp.floor(keep_prob + u3) / keep_prob
    ref3 = (x3.astype(jnp.float32) * scale3.reshape(B3, 1, 1)).astype(jnp.bfloat16)
    assert jnp.allclose(out3.astype(jnp.float32), ref3.astype(jnp.float32),
                        atol=1e-2, rtol=1e-2), "mismatch vs reference (bf16 tiled)"

    # --- bf16 small input: mask decided in f32, multiply in f32, cast to bf16 ---
    xb = x.astype(jnp.bfloat16)
    outb = jax.block_until_ready(module(xb, key=k_mask))
    refb = (xb.astype(jnp.float32) * scale.reshape(B, 1, 1)).astype(jnp.bfloat16)
    assert jnp.allclose(outb.astype(jnp.float32), refb.astype(jnp.float32),
                        atol=1e-2, rtol=1e-2), "mismatch vs reference (bf16)"

    # --- donated-input path (output aliases the x buffer) ---
    out_d = jax.block_until_ready(
        drop_path(x, drop_prob, True, key=k_mask, donate_x=True))
    assert jnp.allclose(out_d, ref, atol=1e-6, rtol=1e-6), "mismatch vs reference (donate)"

    # --- drop_prob == 1.0 guard: all samples dropped, no NaNs ---
    out_all = jax.block_until_ready(drop_path(x, 1.0, True, key=k_mask))
    assert jnp.array_equal(out_all, jnp.zeros_like(x)), "drop_prob=1.0 should be zeros"

    # --- eval / drop_prob == 0 path returns input unchanged ---
    module.training = False
    out_eval = jax.block_until_ready(module(xb, key=k_mask))
    assert jnp.array_equal(out_eval, xb)

    print("KERNEL_OK")
</pallas_src>

<mosaic_0001>
module attributes {stable_mosaic.version = 11 : i64} {
  func.func @_drop_path_kernel(%arg0: i32, %arg1: i32, %arg2: memref<2x1xf32, #tpu.memory_space<vmem>>, %arg3: memref<2x256xf32, #tpu.memory_space<vmem>>, %arg4: memref<2x256xf32, #tpu.memory_space<vmem>>) attributes {dimension_semantics = [#tpu.dimension_semantics<parallel>, #tpu.dimension_semantics<parallel>], iteration_bounds = array<i64: 1, 1>, scalar_prefetch = 0 : i64, scratch_operands = 0 : i64, tpu.core_type = #tpu.core_type<tc>, window_params = [{transform_indices = @transform_0, window_bounds = array<i64: 2, 1>}, {transform_indices = @transform_1, window_bounds = array<i64: 2, 256>}, {transform_indices = @transform_2, window_bounds = array<i64: 2, 256>}]} {
    %c0 = arith.constant 0 : index
    %c0_0 = arith.constant 0 : index
    %0 = vector.load %arg3[%c0, %c0_0] : memref<2x256xf32, #tpu.memory_space<vmem>>, vector<2x256xf32>
    %c0_1 = arith.constant 0 : index
    %c0_2 = arith.constant 0 : index
    %1 = vector.load %arg2[%c0_1, %c0_2] : memref<2x1xf32, #tpu.memory_space<vmem>>, vector<2x1xf32>
    %2 = vector.broadcast %1 : vector<2x1xf32> to vector<2x256xf32>
    %3 = arith.mulf %0, %2 : vector<2x256xf32>
    %c0_3 = arith.constant 0 : index
    %c0_4 = arith.constant 0 : index
    %4 = vector.load %arg4[%c0_3, %c0_4] : memref<2x256xf32, #tpu.memory_space<vmem>>, vector<2x256xf32>
    tpu.vector_store %arg4[%c0_3, %c0_4], %3 {strides = array<i32>} : memref<2x256xf32, #tpu.memory_space<vmem>>, vector<2x256xf32>,
    return
  }
  func.func @transform_0(%arg0: i32, %arg1: i32) -> (i32, i32) {
    %c0_i32 = arith.constant 0 : i32
    %c0_i32_0 = arith.constant 0 : i32
    return %arg0, %c0_i32 : i32, i32
  }
  func.func @transform_1(%arg0: i32, %arg1: i32) -> (i32, i32) {
    %c0_i32 = arith.constant 0 : i32
    return %arg0, %arg1 : i32, i32
  }
  func.func @transform_2(%arg0: i32, %arg1: i32) -> (i32, i32) {
    %c0_i32 = arith.constant 0 : i32
    return %arg0, %arg1 : i32, i32
  }
}

</mosaic_0001>

<bundles_post_ra>
// kernel: tpu_custom_call.1
= control target key start
LH: loop header
LB: loop body
LE: loop exit
PB: predicated region body
PF: predicated region fallthrough
CT: control target
= control target key end

     0   :  { %7 = vsyncpa [#allocation3], 0  ;;  %s141_s0 = inlined_call_operand.vmem [shape: f32[2,1], index: 0, kind: input, shape index: {}]   ;;  %s142_s1 = inlined_call_operand.hbm [shape: f32[2,256], index: 1, kind: input, shape index: {}]   ;;  %s143_s2 = inlined_call_operand.hbm [shape: f32[2,256], index: 2, kind: output, shape index: {}]  }
   0x1   :  { %8 = vsyncpa [#allocation4], 0  ;;  %s16_s11 = sshll.u32 %s142_s1, 4  ;;  %s113_s12 = smov [#allocation2]   ;;  %s17_s11 = int_to_ptr.hbm [resolvable:$true] %s16_s11 }
   0x2   :  { %s18_s13 = sshll.u32 %s113_s12, 4  ;;  %s19_s13 = int_to_ptr.vmem [resolvable:$true] %s18_s13 }
   0x3   :  { %21 = dma.hbm_to_vmem [thread:$0]  %s17_s11, 64, %s19_s13, [#allocation3]  }
   0x4   :  { %109 = dma.done.wait [#allocation3], 64  }
   0x5   :  { %110 = vsyncadd [#allocation3], 4294967232  ;;  %v114_v0 = vmov 0   ;;  %v27_v1 = vld [vmem:[%s141_s0] sm:$0x3]  ;;  %s116_s1 = smov [#allocation5]  }
   0x6   :  { %60 = vset.pattern.permute.xlu0 %v114_v0  ;;  %v115_v2 = vmov 269488144   ;;  %v26_v6 = vld [vmem:[#allocation2] sm:$0xf]  ;;  %s44_s16 = sshll.u32 %s116_s1, 4  ;;  %s46_s19 = sshll.u32 %s143_s2, 4  ;;  %s45_s16 = int_to_ptr.vmem [resolvable:$true] %s44_s16  ;;  %s47_s19 = int_to_ptr.hbm [resolvable:$true] %s46_s19 }
   0x7   :  { %30 = vperm.xlu0 %60, %v27_v1   ;;  %v33_v3 = vunpack.c.l.s4 %v115_v2 }
   0x9   :  { %v34_v4 = vunpack.c.0.s8 %v33_v3 }
  0x79   :  { %v31_v5 = vpop.permute.xlu0 %30 }
  0x7a   :  { %v35_v7 = vperm.slane %v31_v5, %v34_v4 }
  0x7c   :  { %v37_v8 = vmul.f32 %v35_v7, %v26_v6 }
  0x7e   :  { %38 = vst [vmem:[#allocation5] sm:$0xf] %v37_v8 }
  0x7f   :  { %49 = dma.vmem_to_hbm [thread:$0]  %s45_s16, 64, %s47_s19, [#allocation4]  }
  0x80   :  { %111 = dma.done.wait [#allocation4], 64  }
  0x81   :  { %112 = vsyncadd [#allocation4], 4294967232 }
  0x82   :  { %54 = vsyncpa [#allocation3], 1 }
  0x83   :  { %55 = vsyncpa [#allocation4], 1 }

</bundles_post_ra>
